<compile_context>
chip_gen: v6e
topology: v6e:2x2x1
jax: 0.10.0
libtpu: 0.0.40
codegen_flags: <defaults>
</compile_context>

<pallas_src>
import math

import jax
import jax.numpy as jnp
from jax import lax
from jax.experimental import pallas as pl
from jax.experimental.pallas import tpu as pltpu


def self_attention_kernel(x_ref, wq_ref, wk_ref, wv_ref, wp_ref, pos_ref, o_ref):
    """One grid step == (one batch element, one attention head).

    x_ref   : (1, T, E)  bf16 tokens for this batch element (re-used across heads)
    wq/wk/wv: (1, E, D)  bf16 per-head projection weights (x @ W layout)
    wp_ref  : (1, D, E)  bf16 rows of the output projection for this head
    pos_ref : (D, P)     bf16 pos_emb_k^T (shared across heads)
    o_ref   : (1, T, E)  f32 output block, accumulated across the head axis
    """
    h = pl.program_id(1)

    x = x_ref[0]          # (T, E)
    wq = wq_ref[0]        # (E, D)
    wk = wk_ref[0]
    wv = wv_ref[0]
    wp = wp_ref[0]        # (D, E)
    pos_t = pos_ref[...]  # (D, P)

    T = x.shape[0]
    D = wq.shape[1]
    P = pos_t.shape[1]
    R = P // 2
    scale = 1.0 / math.sqrt(D)

    # --- Q/K/V projections for this head (bf16 MXU inputs, f32 accumulation). ---
    # 1/sqrt(D) is folded into q once: both att_val and att_pos are linear in q,
    # so this matches the reference (att_val + att_pos) * scale exactly.
    q = jnp.dot(x, wq, preferred_element_type=jnp.float32) * scale   # (T, D) f32
    k = jnp.dot(x, wk, preferred_element_type=jnp.float32)           # (T, D) f32
    v = jnp.dot(x, wv, preferred_element_type=jnp.float32)           # (T, D) f32
    qb = q.astype(jnp.bfloat16)
    kb = k.astype(jnp.bfloat16)
    vb = v.astype(jnp.bfloat16)

    # --- Content logits: q @ k^T via dot_general contracting on D (no explicit .T). ---
    att_val = lax.dot_general(qb, kb, (((1,), (1,)), ((), ())),
                              preferred_element_type=jnp.float32)    # (T, T) f32

    # --- Relative-position logits. ---
    # rel[i, p] = q[i] . pos_emb_k[p]        (T, P) on the MXU
    rel = jnp.dot(qb, pos_t, preferred_element_type=jnp.float32)     # (T, P) f32

    # Gather rel[i, clip(j-i, -R, R-1) % P] built from broadcasted_iota masks.
    # Only (T, T) 2-D intermediates; no (T, T, P) tensor in VMEM / vregs.
    rows = lax.broadcasted_iota(jnp.int32, (T, T), 0)
    cols = lax.broadcasted_iota(jnp.int32, (T, T), 1)
    delta = jnp.clip(cols - rows, -R, R - 1)                          # (T, T) int32
    att_pos = jnp.zeros((T, T), jnp.float32)
    for p in range(P):                     # static, small unrolled loop over 2R columns
        d_p = p if p < R else p - P        # column p of rel holds relative distance d_p
        att_pos = att_pos + jnp.where(delta == d_p, rel[:, p:p + 1], 0.0)

    # --- Numerically-stable softmax in f32 (divide on the EUP). ---
    s = att_val + att_pos
    s = s - jnp.max(s, axis=-1, keepdims=True)
    e = jnp.exp(s)
    att = e * pl.reciprocal(jnp.sum(e, axis=-1, keepdims=True), approx=True)

    # --- Weighted values + fused per-head output projection. ---
    y = jnp.dot(att.astype(jnp.bfloat16), vb,
                preferred_element_type=jnp.float32)                   # (T, D) f32

    @pl.when(h == 0)
    def _init():
        o_ref[...] = jnp.zeros_like(o_ref)

    # Accumulate this head's contribution; all stores are full-lane (T, E) writes.
    o_ref[0] += jnp.dot(y.astype(jnp.bfloat16), wp,
                        preferred_element_type=jnp.float32)


def self_attention_pallas(x, params, config, *, compute_dtype=jnp.bfloat16):
    B, T, E = x.shape
    H = config['n_head']
    assert E % H == 0
    D = E // H
    R = config['pos_emb_radius']
    P = 2 * R

    cd = compute_dtype
    xc = x.astype(cd)

    # nn.Linear stores (out, in); pre-transpose so the kernel computes x @ W, and
    # split the head dimension out so BlockSpecs pick per-head slices at block
    # granularity (no sub-128-lane column slicing inside the kernel).
    wq_h = params['wq'].T.reshape(E, H, D).transpose(1, 0, 2).astype(cd)   # (H, E, D)
    wk_h = params['wk'].T.reshape(E, H, D).transpose(1, 0, 2).astype(cd)   # (H, E, D)
    wv_h = params['wv'].T.reshape(E, H, D).transpose(1, 0, 2).astype(cd)   # (H, E, D)
    wp_h = params['wproj'].T.reshape(H, D, E).astype(cd)                   # (H, D, E)
    pos_t = params['pos_emb_k'].T.astype(cd)                               # (D, P)

    grid_spec = pltpu.PrefetchScalarGridSpec(
        num_scalar_prefetch=0,
        grid=(B, H),                                              # head axis innermost
        in_specs=[
            pl.BlockSpec((1, T, E), lambda b, h: (b, 0, 0)),      # x (constant across h)
            pl.BlockSpec((1, E, D), lambda b, h: (h, 0, 0)),      # wq head slice
            pl.BlockSpec((1, E, D), lambda b, h: (h, 0, 0)),      # wk head slice
            pl.BlockSpec((1, E, D), lambda b, h: (h, 0, 0)),      # wv head slice
            pl.BlockSpec((1, D, E), lambda b, h: (h, 0, 0)),      # wproj head rows
            pl.BlockSpec((D, P), lambda b, h: (0, 0)),            # pos_emb_k^T (shared)
        ],
        out_specs=pl.BlockSpec((1, T, E), lambda b, h: (b, 0, 0)),
    )

    return pl.pallas_call(
        self_attention_kernel,
        out_shape=jax.ShapeDtypeStruct((B, T, E), jnp.float32),
        grid_spec=grid_spec,
        compiler_params=pltpu.CompilerParams(
            dimension_semantics=("parallel", "arbitrary"),
            vmem_limit_bytes=64 * 1024 * 1024,
        ),
    )(xc, wq_h, wk_h, wv_h, wp_h, pos_t)


def self_attention_reference(x, params, config):
    """Plain-JAX replica of the PyTorch forward, for correctness checking."""
    B, T, E = x.shape
    H = config['n_head']
    D = E // H
    R = config['pos_emb_radius']
    P = 2 * R

    def lin(inp, w):                       # nn.Linear, no bias: x @ W^T
        return inp @ w.T

    def split_heads(t):                    # (B,T,E) -> (B,H,T,D)
        return t.reshape(B, T, H, D).transpose(0, 2, 1, 3)

    q = split_heads(lin(x, params['wq']))
    k = split_heads(lin(x, params['wk']))
    v = split_heads(lin(x, params['wv']))

    att_rel_pos = q @ params['pos_emb_k'].T[None, None]                  # (B,H,T,P)
    ar = jnp.arange(T)
    att_idxs = (jnp.clip(ar[None, :] - ar[:, None], -R, R - 1) % P)      # (T, T)
    idxs = jnp.broadcast_to(att_idxs, (B, H, T, T))
    att_pos = jnp.take_along_axis(att_rel_pos, idxs, axis=3)             # (B,H,T,T)

    att_val = q @ k.transpose(0, 1, 3, 2)
    att = jax.nn.softmax((att_val + att_pos) / math.sqrt(D), axis=-1)
    y = att @ v                                                          # (B,H,T,D)
    y = y.transpose(0, 2, 1, 3).reshape(B, T, E)
    return lin(y, params['wproj'])


def init_params(key, config):
    E = config['embed_size']
    H = config['n_head']
    D = E // H
    R = config['pos_emb_radius']
    k0, k1, k2, k3, k4 = jax.random.split(key, 5)
    bound = 1.0 / math.sqrt(E)   # nn.Linear default uniform init range
    return {
        'pos_emb_k': 0.02 * jax.random.normal(k0, (2 * R, D), jnp.float32),
        'wq': jax.random.uniform(k1, (E, E), jnp.float32, -bound, bound),
        'wk': jax.random.uniform(k2, (E, E), jnp.float32, -bound, bound),
        'wv': jax.random.uniform(k3, (E, E), jnp.float32, -bound, bound),
        'wproj': jax.random.uniform(k4, (E, E), jnp.float32, -bound, bound),
    }


if __name__ == "__main__":
    config = {'embed_size': 32, 'n_head': 4, 'pos_emb_radius': 4}
    B, T = 2, 8
    E = config['embed_size']

    key = jax.random.PRNGKey(0)
    kx, kp = jax.random.split(key)
    x = jax.random.normal(kx, (B, T, E), jnp.float32)
    params = init_params(kp, config)

    y_kernel = jax.block_until_ready(self_attention_pallas(x, params, config))

    # Apples-to-apples reference: same bf16 input rounding, f32 math.
    x_r = x.astype(jnp.bfloat16).astype(jnp.float32)
    params_r = jax.tree_util.tree_map(
        lambda w: w.astype(jnp.bfloat16).astype(jnp.float32), params)
    y_ref = self_attention_reference(x_r, params_r, config)

    assert y_kernel.shape == (B, T, E)
    max_err = float(jnp.max(jnp.abs(y_kernel - y_ref)))
    assert jnp.allclose(y_kernel, y_ref, atol=3e-2, rtol=3e-2), max_err

    print("KERNEL_OK")
</pallas_src>

<mosaic_0001>
module attributes {stable_mosaic.version = 11 : i64} {
  func.func @self_attention_kernel(%arg0: i32, %arg1: i32, %arg2: memref<1x8x32xbf16, #tpu.memory_space<vmem>>, %arg3: memref<1x32x8xbf16, #tpu.memory_space<vmem>>, %arg4: memref<1x32x8xbf16, #tpu.memory_space<vmem>>, %arg5: memref<1x32x8xbf16, #tpu.memory_space<vmem>>, %arg6: memref<1x8x32xbf16, #tpu.memory_space<vmem>>, %arg7: memref<8x8xbf16, #tpu.memory_space<vmem>>, %arg8: memref<1x8x32xf32, #tpu.memory_space<vmem>>) attributes {dimension_semantics = [#tpu.dimension_semantics<parallel>, #tpu.dimension_semantics<arbitrary>], iteration_bounds = array<i64: 2, 4>, scalar_prefetch = 0 : i64, scratch_operands = 0 : i64, tpu.core_type = #tpu.core_type<tc>, window_params = [{transform_indices = @transform_0, window_bounds = array<i64: 1, 8, 32>}, {transform_indices = @transform_1, window_bounds = array<i64: 1, 32, 8>}, {transform_indices = @transform_2, window_bounds = array<i64: 1, 32, 8>}, {transform_indices = @transform_3, window_bounds = array<i64: 1, 32, 8>}, {transform_indices = @transform_4, window_bounds = array<i64: 1, 8, 32>}, {pipeline_mode = #tpu.pipeline_mode<synchronous>, transform_indices = @transform_5, window_bounds = array<i64: 8, 8>}, {transform_indices = @transform_6, window_bounds = array<i64: 1, 8, 32>}]} {
    %c0 = arith.constant 0 : index
    %c0_0 = arith.constant 0 : index
    %c0_1 = arith.constant 0 : index
    %0 = vector.load %arg2[%c0, %c0_0, %c0_1] : memref<1x8x32xbf16, #tpu.memory_space<vmem>>, vector<1x8x32xbf16>
    %1 = vector.shape_cast %0 : vector<1x8x32xbf16> to vector<8x32xbf16>
    %c0_2 = arith.constant 0 : index
    %c0_3 = arith.constant 0 : index
    %c0_4 = arith.constant 0 : index
    %2 = vector.load %arg3[%c0_2, %c0_3, %c0_4] : memref<1x32x8xbf16, #tpu.memory_space<vmem>>, vector<1x32x8xbf16>
    %3 = vector.shape_cast %2 : vector<1x32x8xbf16> to vector<32x8xbf16>
    %c0_5 = arith.constant 0 : index
    %c0_6 = arith.constant 0 : index
    %c0_7 = arith.constant 0 : index
    %4 = vector.load %arg4[%c0_5, %c0_6, %c0_7] : memref<1x32x8xbf16, #tpu.memory_space<vmem>>, vector<1x32x8xbf16>
    %5 = vector.shape_cast %4 : vector<1x32x8xbf16> to vector<32x8xbf16>
    %c0_8 = arith.constant 0 : index
    %c0_9 = arith.constant 0 : index
    %c0_10 = arith.constant 0 : index
    %6 = vector.load %arg5[%c0_8, %c0_9, %c0_10] : memref<1x32x8xbf16, #tpu.memory_space<vmem>>, vector<1x32x8xbf16>
    %7 = vector.shape_cast %6 : vector<1x32x8xbf16> to vector<32x8xbf16>
    %c0_11 = arith.constant 0 : index
    %c0_12 = arith.constant 0 : index
    %c0_13 = arith.constant 0 : index
    %8 = vector.load %arg6[%c0_11, %c0_12, %c0_13] : memref<1x8x32xbf16, #tpu.memory_space<vmem>>, vector<1x8x32xbf16>
    %9 = vector.shape_cast %8 : vector<1x8x32xbf16> to vector<8x32xbf16>
    %c0_14 = arith.constant 0 : index
    %c0_15 = arith.constant 0 : index
    %10 = vector.load %arg7[%c0_14, %c0_15] : memref<8x8xbf16, #tpu.memory_space<vmem>>, vector<8x8xbf16>
    %cst = arith.constant dense<0.000000e+00> : vector<8x8xf32>
    %11 = tpu.matmul %1, %3, %cst {dimension_numbers = #tpu.dot_dimension_numbers<[1], [0], [0], [1], [0, 0, 1, 1], [], []>} : vector<8x32xbf16>, vector<32x8xbf16>, vector<8x8xf32> -> vector<8x8xf32>
    %cst_16 = arith.constant 0.353553385 : f32
    %12 = vector.broadcast %cst_16 : f32 to vector<8x8xf32>
    %13 = arith.mulf %11, %12 : vector<8x8xf32>
    %cst_17 = arith.constant dense<0.000000e+00> : vector<8x8xf32>
    %14 = tpu.matmul %1, %5, %cst_17 {dimension_numbers = #tpu.dot_dimension_numbers<[1], [0], [0], [1], [0, 0, 1, 1], [], []>} : vector<8x32xbf16>, vector<32x8xbf16>, vector<8x8xf32> -> vector<8x8xf32>
    %cst_18 = arith.constant dense<0.000000e+00> : vector<8x8xf32>
    %15 = tpu.matmul %1, %7, %cst_18 {dimension_numbers = #tpu.dot_dimension_numbers<[1], [0], [0], [1], [0, 0, 1, 1], [], []>} : vector<8x32xbf16>, vector<32x8xbf16>, vector<8x8xf32> -> vector<8x8xf32>
    %16 = arith.truncf %13 : vector<8x8xf32> to vector<8x8xbf16>
    %17 = arith.truncf %14 : vector<8x8xf32> to vector<8x8xbf16>
    %18 = arith.truncf %15 : vector<8x8xf32> to vector<8x8xbf16>
    %cst_19 = arith.constant dense<0.000000e+00> : vector<8x8xf32>
    %19 = tpu.matmul %16, %17, %cst_19 {dimension_numbers = #tpu.dot_dimension_numbers<[1], [1], [0], [0], [0, 0, 1, 0], [], []>} : vector<8x8xbf16>, vector<8x8xbf16>, vector<8x8xf32> -> vector<8x8xf32>
    %cst_20 = arith.constant dense<0.000000e+00> : vector<8x8xf32>
    %20 = tpu.matmul %16, %10, %cst_20 {dimension_numbers = #tpu.dot_dimension_numbers<[1], [0], [0], [1], [0, 0, 1, 1], [], []>} : vector<8x8xbf16>, vector<8x8xbf16>, vector<8x8xf32> -> vector<8x8xf32>
    %21 = tpu.iota {dimensions = array<i32: 0>} : vector<8x8xi32>
    %22 = tpu.iota {dimensions = array<i32: 1>} : vector<8x8xi32>
    %23 = arith.subi %22, %21 : vector<8x8xi32>
    %c-4_i32 = arith.constant -4 : i32
    %c3_i32 = arith.constant 3 : i32
    %24 = vector.broadcast %c-4_i32 : i32 to vector<8x8xi32>
    %25 = arith.maxsi %24, %23 : vector<8x8xi32>
    %26 = vector.broadcast %c3_i32 : i32 to vector<8x8xi32>
    %27 = arith.minsi %26, %25 : vector<8x8xi32>
    %cst_21 = arith.constant 0.000000e+00 : f32
    %28 = vector.broadcast %cst_21 : f32 to vector<8x8xf32>
    %c0_i32 = arith.constant 0 : i32
    %29 = vector.broadcast %c0_i32 : i32 to vector<8x8xi32>
    %30 = arith.cmpi eq, %27, %29 : vector<8x8xi32>
    %31 = vector.extract_strided_slice %20 {offsets = [0, 0], sizes = [8, 1], strides = [1, 1]} : vector<8x8xf32> to vector<8x1xf32>
    %cst_22 = arith.constant 0.000000e+00 : f32
    %32 = vector.shape_cast %31 : vector<8x1xf32> to vector<8x1xf32>
    %33 = vector.broadcast %32 : vector<8x1xf32> to vector<8x8xf32>
    %34 = vector.broadcast %cst_22 : f32 to vector<8x8xf32>
    %35 = arith.select %30, %33, %34 : vector<8x8xi1>, vector<8x8xf32>
    %36 = arith.addf %28, %35 : vector<8x8xf32>
    %c1_i32 = arith.constant 1 : i32
    %37 = vector.broadcast %c1_i32 : i32 to vector<8x8xi32>
    %38 = arith.cmpi eq, %27, %37 : vector<8x8xi32>
    %39 = vector.extract_strided_slice %20 {offsets = [0, 1], sizes = [8, 1], strides = [1, 1]} : vector<8x8xf32> to vector<8x1xf32>
    %cst_23 = arith.constant 0.000000e+00 : f32
    %40 = vector.shape_cast %39 : vector<8x1xf32> to vector<8x1xf32>
    %41 = vector.broadcast %40 : vector<8x1xf32> to vector<8x8xf32>
    %42 = vector.broadcast %cst_23 : f32 to vector<8x8xf32>
    %43 = arith.select %38, %41, %42 : vector<8x8xi1>, vector<8x8xf32>
    %44 = arith.addf %36, %43 : vector<8x8xf32>
    %c2_i32 = arith.constant 2 : i32
    %45 = vector.broadcast %c2_i32 : i32 to vector<8x8xi32>
    %46 = arith.cmpi eq, %27, %45 : vector<8x8xi32>
    %47 = vector.extract_strided_slice %20 {offsets = [0, 2], sizes = [8, 1], strides = [1, 1]} : vector<8x8xf32> to vector<8x1xf32>
    %cst_24 = arith.constant 0.000000e+00 : f32
    %48 = vector.shape_cast %47 : vector<8x1xf32> to vector<8x1xf32>
    %49 = vector.broadcast %48 : vector<8x1xf32> to vector<8x8xf32>
    %50 = vector.broadcast %cst_24 : f32 to vector<8x8xf32>
    %51 = arith.select %46, %49, %50 : vector<8x8xi1>, vector<8x8xf32>
    %52 = arith.addf %44, %51 : vector<8x8xf32>
    %c3_i32_25 = arith.constant 3 : i32
    %53 = vector.broadcast %c3_i32_25 : i32 to vector<8x8xi32>
    %54 = arith.cmpi eq, %27, %53 : vector<8x8xi32>
    %55 = vector.extract_strided_slice %20 {offsets = [0, 3], sizes = [8, 1], strides = [1, 1]} : vector<8x8xf32> to vector<8x1xf32>
    %cst_26 = arith.constant 0.000000e+00 : f32
    %56 = vector.shape_cast %55 : vector<8x1xf32> to vector<8x1xf32>
    %57 = vector.broadcast %56 : vector<8x1xf32> to vector<8x8xf32>
    %58 = vector.broadcast %cst_26 : f32 to vector<8x8xf32>
    %59 = arith.select %54, %57, %58 : vector<8x8xi1>, vector<8x8xf32>
    %60 = arith.addf %52, %59 : vector<8x8xf32>
    %c-4_i32_27 = arith.constant -4 : i32
    %61 = vector.broadcast %c-4_i32_27 : i32 to vector<8x8xi32>
    %62 = arith.cmpi eq, %27, %61 : vector<8x8xi32>
    %63 = vector.extract_strided_slice %20 {offsets = [0, 4], sizes = [8, 1], strides = [1, 1]} : vector<8x8xf32> to vector<8x1xf32>
    %cst_28 = arith.constant 0.000000e+00 : f32
    %64 = vector.shape_cast %63 : vector<8x1xf32> to vector<8x1xf32>
    %65 = vector.broadcast %64 : vector<8x1xf32> to vector<8x8xf32>
    %66 = vector.broadcast %cst_28 : f32 to vector<8x8xf32>
    %67 = arith.select %62, %65, %66 : vector<8x8xi1>, vector<8x8xf32>
    %68 = arith.addf %60, %67 : vector<8x8xf32>
    %c-3_i32 = arith.constant -3 : i32
    %69 = vector.broadcast %c-3_i32 : i32 to vector<8x8xi32>
    %70 = arith.cmpi eq, %27, %69 : vector<8x8xi32>
    %71 = vector.extract_strided_slice %20 {offsets = [0, 5], sizes = [8, 1], strides = [1, 1]} : vector<8x8xf32> to vector<8x1xf32>
    %cst_29 = arith.constant 0.000000e+00 : f32
    %72 = vector.shape_cast %71 : vector<8x1xf32> to vector<8x1xf32>
    %73 = vector.broadcast %72 : vector<8x1xf32> to vector<8x8xf32>
    %74 = vector.broadcast %cst_29 : f32 to vector<8x8xf32>
    %75 = arith.select %70, %73, %74 : vector<8x8xi1>, vector<8x8xf32>
    %76 = arith.addf %68, %75 : vector<8x8xf32>
    %c-2_i32 = arith.constant -2 : i32
    %77 = vector.broadcast %c-2_i32 : i32 to vector<8x8xi32>
    %78 = arith.cmpi eq, %27, %77 : vector<8x8xi32>
    %79 = vector.extract_strided_slice %20 {offsets = [0, 6], sizes = [8, 1], strides = [1, 1]} : vector<8x8xf32> to vector<8x1xf32>
    %cst_30 = arith.constant 0.000000e+00 : f32
    %80 = vector.shape_cast %79 : vector<8x1xf32> to vector<8x1xf32>
    %81 = vector.broadcast %80 : vector<8x1xf32> to vector<8x8xf32>
    %82 = vector.broadcast %cst_30 : f32 to vector<8x8xf32>
    %83 = arith.select %78, %81, %82 : vector<8x8xi1>, vector<8x8xf32>
    %84 = arith.addf %76, %83 : vector<8x8xf32>
    %c-1_i32 = arith.constant -1 : i32
    %85 = vector.broadcast %c-1_i32 : i32 to vector<8x8xi32>
    %86 = arith.cmpi eq, %27, %85 : vector<8x8xi32>
    %87 = vector.extract_strided_slice %20 {offsets = [0, 7], sizes = [8, 1], strides = [1, 1]} : vector<8x8xf32> to vector<8x1xf32>
    %cst_31 = arith.constant 0.000000e+00 : f32
    %88 = vector.shape_cast %87 : vector<8x1xf32> to vector<8x1xf32>
    %89 = vector.broadcast %88 : vector<8x1xf32> to vector<8x8xf32>
    %90 = vector.broadcast %cst_31 : f32 to vector<8x8xf32>
    %91 = arith.select %86, %89, %90 : vector<8x8xi1>, vector<8x8xf32>
    %92 = arith.addf %84, %91 : vector<8x8xf32>
    %93 = arith.addf %19, %92 : vector<8x8xf32>
    %cst_32 = arith.constant dense<0xFF800000> : vector<8xf32>
    %94 = vector.multi_reduction <maximumf>, %93, %cst_32 [1] : vector<8x8xf32> to vector<8xf32>
    %95 = vector.shape_cast %94 : vector<8xf32> to vector<8x1xf32>
    %96 = vector.broadcast %95 : vector<8x1xf32> to vector<8x8xf32>
    %97 = arith.subf %93, %96 : vector<8x8xf32>
    %98 = math.exp %97 : vector<8x8xf32>
    %cst_33 = arith.constant dense<0.000000e+00> : vector<8xf32>
    %99 = vector.multi_reduction <add>, %98, %cst_33 [1] : vector<8x8xf32> to vector<8xf32>
    %100 = vector.shape_cast %99 : vector<8xf32> to vector<8x1xf32>
    %101 = tpu.reciprocal %100 {approx = true} : vector<8x1xf32> -> vector<8x1xf32>
    %102 = vector.broadcast %101 : vector<8x1xf32> to vector<8x8xf32>
    %103 = arith.mulf %98, %102 : vector<8x8xf32>
    %104 = arith.truncf %103 : vector<8x8xf32> to vector<8x8xbf16>
    %cst_34 = arith.constant dense<0.000000e+00> : vector<8x8xf32>
    %105 = tpu.matmul %104, %18, %cst_34 {dimension_numbers = #tpu.dot_dimension_numbers<[1], [0], [0], [1], [0, 0, 1, 1], [], []>} : vector<8x8xbf16>, vector<8x8xbf16>, vector<8x8xf32> -> vector<8x8xf32>
    %c0_i32_35 = arith.constant 0 : i32
    %106 = arith.cmpi eq, %arg1, %c0_i32_35 : i32
    %107 = arith.extui %106 : i1 to i32
    %c0_i32_36 = arith.constant 0 : i32
    %108 = arith.cmpi ne, %107, %c0_i32_36 : i32
    scf.if %108 {
      %cst_44 = arith.constant 0.000000e+00 : f32
      %117 = vector.broadcast %cst_44 : f32 to vector<1x8x32xf32>
      %c0_45 = arith.constant 0 : index
      %c0_46 = arith.constant 0 : index
      %c0_47 = arith.constant 0 : index
      %118 = vector.load %arg8[%c0_45, %c0_46, %c0_47] : memref<1x8x32xf32, #tpu.memory_space<vmem>>, vector<1x8x32xf32>
      tpu.vector_store %arg8[%c0_45, %c0_46, %c0_47], %117 {strides = array<i32>} : memref<1x8x32xf32, #tpu.memory_space<vmem>>, vector<1x8x32xf32>,
    } else {
    }
    %c0_37 = arith.constant 0 : index
    %c0_38 = arith.constant 0 : index
    %c0_39 = arith.constant 0 : index
    %109 = vector.load %arg8[%c0_37, %c0_38, %c0_39] : memref<1x8x32xf32, #tpu.memory_space<vmem>>, vector<1x8x32xf32>
    %110 = vector.shape_cast %109 : vector<1x8x32xf32> to vector<8x32xf32>
    %111 = arith.truncf %105 : vector<8x8xf32> to vector<8x8xbf16>
    %cst_40 = arith.constant dense<0.000000e+00> : vector<8x32xf32>
    %112 = tpu.matmul %111, %9, %cst_40 {dimension_numbers = #tpu.dot_dimension_numbers<[1], [0], [0], [1], [0, 0, 1, 1], [], []>} : vector<8x8xbf16>, vector<8x32xbf16>, vector<8x32xf32> -> vector<8x32xf32>
    %113 = arith.addf %110, %112 : vector<8x32xf32>
    %c0_41 = arith.constant 0 : index
    %c0_42 = arith.constant 0 : index
    %c0_43 = arith.constant 0 : index
    %114 = vector.load %arg8[%c0_41, %c0_42, %c0_43] : memref<1x8x32xf32, #tpu.memory_space<vmem>>, vector<1x8x32xf32>
    %115 = vector.shape_cast %114 : vector<1x8x32xf32> to vector<8x32xf32>
    %116 = vector.shape_cast %113 : vector<8x32xf32> to vector<1x8x32xf32>
    tpu.vector_store %arg8[%c0_41, %c0_42, %c0_43], %116 {strides = array<i32>} : memref<1x8x32xf32, #tpu.memory_space<vmem>>, vector<1x8x32xf32>,
    return
  }
  func.func @transform_0(%arg0: i32, %arg1: i32) -> (i32, i32, i32) {
    %c0_i32 = arith.constant 0 : i32
    %c0_i32_0 = arith.constant 0 : i32
    %c0_i32_1 = arith.constant 0 : i32
    return %arg0, %c0_i32, %c0_i32_0 : i32, i32, i32
  }
  func.func @transform_1(%arg0: i32, %arg1: i32) -> (i32, i32, i32) {
    %c0_i32 = arith.constant 0 : i32
    %c0_i32_0 = arith.constant 0 : i32
    %c0_i32_1 = arith.constant 0 : i32
    return %arg1, %c0_i32, %c0_i32_0 : i32, i32, i32
  }
  func.func @transform_2(%arg0: i32, %arg1: i32) -> (i32, i32, i32) {
    %c0_i32 = arith.constant 0 : i32
    %c0_i32_0 = arith.constant 0 : i32
    %c0_i32_1 = arith.constant 0 : i32
    return %arg1, %c0_i32, %c0_i32_0 : i32, i32, i32
  }
  func.func @transform_3(%arg0: i32, %arg1: i32) -> (i32, i32, i32) {
    %c0_i32 = arith.constant 0 : i32
    %c0_i32_0 = arith.constant 0 : i32
    %c0_i32_1 = arith.constant 0 : i32
    return %arg1, %c0_i32, %c0_i32_0 : i32, i32, i32
  }
  func.func @transform_4(%arg0: i32, %arg1: i32) -> (i32, i32, i32) {
    %c0_i32 = arith.constant 0 : i32
    %c0_i32_0 = arith.constant 0 : i32
    %c0_i32_1 = arith.constant 0 : i32
    return %arg1, %c0_i32, %c0_i32_0 : i32, i32, i32
  }
  func.func @transform_5(%arg0: i32, %arg1: i32) -> (i32, i32) {
    %c0_i32 = arith.constant 0 : i32
    %c0_i32_0 = arith.constant 0 : i32
    %c0_i32_1 = arith.constant 0 : i32
    return %c0_i32, %c0_i32_0 : i32, i32
  }
  func.func @transform_6(%arg0: i32, %arg1: i32) -> (i32, i32, i32) {
    %c0_i32 = arith.constant 0 : i32
    %c0_i32_0 = arith.constant 0 : i32
    %c0_i32_1 = arith.constant 0 : i32
    return %arg0, %c0_i32, %c0_i32_0 : i32, i32, i32
  }
}

</mosaic_0001>

<bundles_post_ra>
// kernel: tpu_custom_call.1
= control target key start
LH: loop header
LB: loop body
LE: loop exit
PB: predicated region body
PF: predicated region fallthrough
CT: control target
= control target key end

     0   :  { %11 = vsyncpa [#allocation3], 0  ;;  %s1458_s0 = inlined_call_operand.vmem [shape: bf16[2,8,32], index: 0, kind: input, shape index: {}]   ;;  %s1459_s1 = inlined_call_operand.vmem [shape: bf16[4,32,8], index: 1, kind: input, shape index: {}]   ;;  %s1460_s2 = inlined_call_operand.vmem [shape: bf16[4,32,8], index: 2, kind: input, shape index: {}]   ;;  %s1461_s3 = inlined_call_operand.vmem [shape: bf16[4,32,8], index: 3, kind: input, shape index: {}]   ;;  %s1462_s4 = inlined_call_operand.vmem [shape: bf16[4,8,32], index: 4, kind: input, shape index: {}]   ;;  %s1463_s5 = inlined_call_operand.vmem [shape: bf16[8,8], index: 5, kind: input, shape index: {}]   ;;  %s1464_s6 = inlined_call_operand.hbm [shape: f32[2,8,32], index: 6, kind: output, shape index: {}]  }
   0x1   :  { %13 = vsyncpa [#allocation3 + $0x1], 0  ;;  %s1260_s21 = smov 0   ;;  %s1262_s22 = smov 0  }
   0x2   :  { %s1264_s23 = smov 0   ;;  %s1266_s24 = smov 0  }
   0x3   :  { %s1268_s25 = smov 0   ;;  %s1270_s26 = smov 0  }
   0x4   :  { %s1272_s27 = smov 0   ;;  %s1274_s28 = smov 0  }
   0x5 LB: > { %1470 = sst [smem:[#allocation5_spill]] %s1191_s23  ;;  %s918_s29 = sadd.s32 4294967295, %s1211_s28   ;;  %s1211_s28 = sphi %s1274_s28, %s19_s28   ;;  %s1207_s27 = sphi %s1272_s27, %s1484_s27   ;;  %s1203_s26 = sphi %s1270_s26, %s1483_s26   ;;  %s1199_s25 = sphi %s1268_s25, %s1482_s25   ;;  %s1195_s24 = sphi %s1266_s24, %s1481_s24   ;;  %s1191_s23 = sphi %s1264_s23, %s1480_s23   ;;  %s1187_s22 = sphi %s1262_s22, %s1486_s22   ;;  %s1183_s21 = sphi %s1260_s21, %s1485_s21  }
   0x6   : > { %1471 = sst [smem:[#allocation6_spill]] %s1203_s26  ;;  %s919_s30 = sadd.s32 4294967294, %s1211_s28  }
   0x7   : > { %1472 = sst [smem:[#allocation7_spill]] %s1207_s27  ;;  %s28_s7 = sadd.s32 1, %s1203_s26 }
   0x8   : > { %p29_p0 = scmp.ge.s32.totalorder %s28_s7, 4  ;;  %s31_s8 = sadd.s32 1, %s1207_s27 }
   0x9   : > { %p199_p1 = scmp.ne.s32.totalorder %s1191_s23, %s1187_s22  ;;  %p200_p2 = scmp.eq.s32.totalorder %s918_s29, 7 }
   0xa   : > { %s1488_s7 = smov (%p29_p0, %s28_s7), 0  ;;  %s1490_s8 = smov (!%p29_p0, %s31_s8), %s1207_s27 }
   0xb   : > { %1473 = sst [smem:[#allocation8_spill]] %s1488_s7  ;;  %p1309_p3 = por %p200_p2, %p199_p1 }
   0xc   : > { %p205_p4 = scmp.ne.s32.totalorder %s1187_s22, %s1183_s21  ;;  %p33_p5 = scmp.ge.s32.totalorder %s1490_s8, 2 }
   0xd   : > { %p206_p6 = scmp.eq.s32.totalorder %s919_s30, 7  ;;  %p922_p7 = scmp.ge.s32.totalorder %s1211_s28, 1 }
   0xe   : > { %p265_p8 = scmp.lt.s32.totalorder %s1211_s28, 9  ;;  %s1492_s8 = smov (%p33_p5, %s1490_s8), 0 }
   0xf   : > { %1475 = sst [smem:[#allocation9_spill]] %s1492_s8  ;;  %p1319_p9 = por %p206_p6, %p205_p4 }
  0x10   : > { %p266_p10 = pnand %p922_p7, %p265_p8  ;;  %s186_s11 = ssub.s32 %s1207_s27, %s1492_s8 }
  0x11   : > { %s189_s12 = sadd.s32 1, %s1191_s23  ;;  %p187_p11 = scmp.eq.s32.totalorder %s186_s11, 0 }
  0x12   : > { %269 = sbr.rel (%p266_p10) target bundleno = 1302 (0x516), region = 44  ;;  %s1465_s14 = sand.u32 (!%p266_p10), 1, %s1187_s22  }
  0x13   : > { %s1327_s13 = scalar_select %p187_p11, %s1191_s23, %s189_s12  }
  0x14   : > { %p317_p12 = scmp.lt.s32.totalorder (!%p266_p10), %s1195_s24, 3  ;;  %s1333_s15 = sshll.u32 (!%p266_p10), %s1465_s14, 3 }
  0x15   : > { %1477 = sst [smem:[#allocation10_spill]] %s1327_s13  ;;  %p313_p13 = scmp.lt.s32.totalorder (!%p266_p10), %s1199_s25, 1 }
  0x16   : > { %p944_p0 = scmp.ne.s32.totalorder (!%p266_p10), %s1195_s24, 0 }
  0x17   : > { %v1213_v0 = vmov 0.0   ;;  %vm1214_vm0 = vmmov 0   ;;  %s318_s16 = scalar_select %p317_p12, %s1195_s24, 3  ;;  %vm364_vm1 = vcmask 261120   ;;  %v351_v6 = vld [vmem:[%s1463_s5] sm:$0xf]  ;;  %v564_v45 = vlaneseq }
  0x18   : > { %970 = vmatprep.subr.bf16.mxu0 %v1213_v0  ;;  %978 = vmatprep.subr.bf16.mxu1 %v1213_v0  ;;  %s314_s17 = scalar_select %p313_p13, %s1199_s25, 1  ;;  %vm520_vm2 = vcmask 1043456   ;;  %v1215_v11 = vmov 2   ;;  %v1216_v12 = vmov 0   ;;  %vm516_vm3 = vcmask 64512  }
  0x19   : > { %974 = vmatprep.mubr.msk.bf16.mxu0 %vm1214_vm0, %v1213_v0  ;;  %982 = vmatprep.mubr.msk.bf16.mxu1 %vm1214_vm0, %v1213_v0  ;;  %s950_s18 = sshll.u32 %s318_s16, 4  ;;  %s931_s19 = sshll.u32 %s318_s16, 2  ;;  %v522_v9 = vsel %vm520_vm2, %v351_v6, 0  ;;  %v1217_v34 = vmov 3   ;;  %v1218_v35 = vmov 1   ;;  %v1219_v39 = vmov 4  }
  0x1a   : > { %s321_s30 = scalar_lea.vmem %s1459_s1, %s950_s18  ;;  %s335_s14 = scalar_lea.vmem %s1462_s4, %s931_s19  ;;  %1102 = vset.pattern.permute.xlu1 %v1215_v11  ;;  %1100 = vset.pattern.permute.xlu0 %v1216_v12  ;;  %v1220_v40 = vmov 5   ;;  %v1221_v43 = vmov 6   ;;  %v1222_v44 = vmov 7   ;;  %v565_v46 = vshrl.u32 %v564_v45, 7 }
  0x1b   : > { %v1109_v1 = vld [vmem:[%s321_s30 + $0x8] sm:$0xff]   ;;  %s326_s27 = scalar_lea.vmem %s1460_s2, %s950_s18  ;;  %v1353_v2 = vld [vmem:[%s335_s14] sm:$0xf]  ;;  %s924_s26 = sshll.u32 %s314_s17, 2  ;;  %v567_v47 = vand.u32 127, %v564_v45 }
  0x1c   : > { %971 = vmatpush3.bf16.msra.mxu0 %v1109_v1  ;;  %v1110_v3 = vld [vmem:[%s326_s27 + $0x8] sm:$0xff]   ;;  %s331_s23 = scalar_lea.vmem %s1461_s3, %s950_s18  ;;  %v1111_v4 = vld [vmem:[%s321_s30] sm:$0xff]   ;;  %s316_s19 = scalar_lea.vmem %s1458_s0, %s924_s26 }
  0x1d   : > { %972 = vmatprep.subr.bf16.mxu0 %v1213_v0  ;;  %979 = vmatpush3.bf16.msra.mxu1 %v1110_v3  ;;  %v1112_v5 = vld [vmem:[%s326_s27] sm:$0xff]   ;;  %v1113_v8 = vld [vmem:[%s331_s23 + $0x8] sm:$0xff]   ;;  %v568_v48 = vsub.s32 %v567_v47, %v565_v46 }
  0x1e   : > { %980 = vmatprep.subr.bf16.mxu1 %v1213_v0  ;;  %v337_v7 = vld [vmem:[%s316_s19] sm:$0xf] }
  0x1f   : > { %v1114_v10 = vld [vmem:[%s331_s23] sm:$0xff]   ;;  %vm569_vm4 = vcmp.gt.s32.totalorder %v568_v48, 4294967292  ;;  %s312_s23 = scalar_lea.vmem [#allocation2], %s1333_s15 }
  0x20   : > { %973 = vmatpush3.bf16.msra.mxu0 %v1111_v4  ;;  %v570_v49 = vsel %vm569_vm4, %v568_v48, 4294967292 }
  0x21   : > { %986 = vmatprep.subr.bf16.mxu0 %v1213_v0  ;;  %981 = vmatpush3.bf16.msra.mxu1 %v1112_v5  ;;  %vm571_vm5 = vcmp.lt.s32.totalorder %v570_v49, 3 }
  0x22   : > { %994 = vmatprep.subr.bf16.mxu1 %v1213_v0  ;;  %v572_v50 = vsel %vm571_vm5, %v570_v49, 3 }
  0x23   : > { %975 = vmatmul.mubr.msk.bf16.vlgmr.msra.gmra.mxu0 %vm364_vm1, %v337_v7  ;;  %vm573_vm6 = vcmp.eq.s32.totalorder %v572_v50, 0  ;;  %vm581_vm7 = vcmp.eq.s32.totalorder %v572_v50, 1  ;;  %vm588_vm8 = vcmp.eq.s32.totalorder %v572_v50, 2  ;;  %vm595_vm9 = vcmp.eq.s32.totalorder %v572_v50, 3 }
  0x24   : > { %987 = vmatpush3.bf16.msra.mxu0 %v1113_v8  ;;  %990 = vmatprep.mubr.msk.bf16.mxu0 %vm1214_vm0, %v1213_v0  ;;  %vm602_vm10 = vcmp.eq.s32.totalorder %v572_v50, 4294967292  ;;  %vm609_vm11 = vcmp.eq.s32.totalorder %v572_v50, 4294967293  ;;  %vm616_vm12 = vcmp.eq.s32.totalorder %v572_v50, 4294967294  ;;  %vm623_vm13 = vcmp.eq.s32.totalorder %v572_v50, 4294967295 }
  0x25   : > { %983 = vmatmul.mubr.msk.bf16.vlgmr.msra.gmra.mxu1 %vm364_vm1, %v337_v7  ;;  %988 = vmatprep.subr.bf16.mxu0 %v1213_v0 }
  0x26   : > { %995 = vmatpush3.bf16.msra.mxu1 %v522_v9  ;;  %996 = vmatprep.mubr.msk.bf16.mxu1 %vm1214_vm0, %v1213_v0 }
  0x27   : > { %1006 = vmatprep.subr.bf16.mxu1 %v1213_v0 }
  0x28   : > { %989 = vmatpush3.bf16.msra.mxu0 %v1114_v10 }
  0x29   : > { %1000 = vmatprep.subr.bf16.mxu0 %v1213_v0 }
  0x2b   : > { %991 = vmatmul.mubr.msk.bf16.vlgmr.msra.gmra.mxu0 %vm364_vm1, %v337_v7 }
  0x2c   : > { %1002 = vmatprep.mubr.msk.bf16.mxu0 %vm1214_vm0, %v1213_v0 }
  0xe3   : > { %v402_v13 = vpop.f32.mrf.mxu0 }
  0xe4   : > { %v408_v14 = vmul.f32 0.35355338, %v402_v13 }
  0xe5   : > { %v455_v15 = vpop.f32.mrf.mxu1  ;;  %v976_v16 = vpop.f32.mrf.mxu0 }
  0xe6   : > { %v513_v17 = vpack.c.bf16 %v408_v14, %v408_v14  ;;  %v514_v18 = vpack.c.bf16 %v455_v15, %v455_v15 }
  0xe7   : > { %v405_v19 = vpop.f32.mrf.mxu0  ;;  %v984_v20 = vpop.f32.mrf.mxu1 }
  0xe8   : > { %v631_v21 = vsel %vm516_vm3, %v514_v18, 0  ;;  %997 = vmatmul.mubr.msk.bf16.vlgmr.msra.gmra.mxu1 %vm516_vm3, %v513_v17 }
  0xe9   : > { %1001 = vmatpush3.bf16.xpose.msra.mxu0 %v631_v21  ;;  %v977_v22 = vpop.f32.mrf.mxu0  ;;  %v458_v23 = vpop.f32.mrf.mxu1  ;;  %1008 = vmatprep.mubr.msk.bf16.mxu1 %vm1214_vm0, %v1213_v0 }
  0xeb   : > { %v985_v24 = vpop.f32.mrf.mxu1  ;;  %v507_v25 = vpop.f32.mrf.mxu0 }
  0xec   : > { %v515_v26 = vpack.c.bf16 %v507_v25, %v507_v25 }
  0xed   : > { %v992_v27 = vpop.f32.mrf.mxu0 }
  0xee   : > { %v689_v28 = vsel %vm520_vm2, %v515_v26, 0 }
  0xef   : > { %v510_v29 = vpop.f32.mrf.mxu0  ;;  %1007 = vmatpush3.bf16.msra.mxu1 %v689_v28 }
  0xf0   : > { %1003 = vmatmul.mubr.msk.bf16.vlgmr.msra.gmra.mxu0 %vm516_vm3, %v513_v17 }
  0xf1   : > { %v993_v30 = vpop.f32.mrf.mxu0 }
 0x1a8   : > { %v558_v31 = vpop.f32.mrf.mxu1 }
 0x1a9   : > { %590 = vperm.xlu1 %1102, %v558_v31   ;;  %576 = vperm.xlu0 %1100, %v558_v31  }
 0x1aa   : > { %v998_v32 = vpop.f32.mrf.mxu1 }
 0x1ac   : > { %v561_v33 = vpop.f32.mrf.mxu1 }
 0x1ad   : > { %1103 = vset.pattern.permute.xlu1 %v1217_v34  ;;  %1101 = vset.pattern.permute.xlu0 %v1218_v35 }
 0x1ae   : > { %597 = vperm.xlu1 %1103, %v558_v31   ;;  %583 = vperm.xlu0 %1101, %v558_v31   ;;  %v999_v36 = vpop.f32.mrf.mxu1 }
 0x1b0   : > { %v667_v37 = vpop.f32.mrf.mxu0 }
 0x1b2   : > { %v1004_v38 = vpop.f32.mrf.mxu0  ;;  %1104 = vset.pattern.permute.xlu1 %v1219_v39  ;;  %1105 = vset.pattern.permute.xlu0 %v1220_v40 }
 0x1b3   : > { %604 = vperm.xlu1 %1104, %v558_v31   ;;  %611 = vperm.xlu0 %1105, %v558_v31  }
 0x1b4   : > { %v670_v41 = vpop.f32.mrf.mxu0 }
 0x1b6   : > { %v1005_v42 = vpop.f32.mrf.mxu0 }
 0x1b7   : > { %1106 = vset.pattern.permute.xlu1 %v1221_v43  ;;  %1108 = vset.pattern.permute.xlu0 %v1222_v44 }
 0x1b8   : > { %618 = vperm.xlu1 %1106, %v558_v31  }
 0x1bc   : > { %1107 = vset.pattern.permute.xlu1 %v1222_v44 }
 0x1bd   : > { %625 = vperm.xlu1 %1107, %v558_v31  }
 0x224   : > { %v591_v51 = vpop.permute.xlu1 %590  ;;  %v577_v52 = vpop.permute.xlu0 %576 }
 0x225   : > { %v579_v55 = vsel %vm573_vm6, %v577_v52, 0.0  ;;  %v593_v58 = vsel %vm588_vm8, %v591_v51, 0.0 }
 0x229   : > { %v598_v53 = vpop.permute.xlu1 %597  ;;  %v584_v54 = vpop.permute.xlu0 %583 }
 0x22a   : > { %v586_v56 = vsel %vm581_vm7, %v584_v54, 0.0  ;;  %v600_v60 = vsel %vm595_vm9, %v598_v53, 0.0 }
 0x22b   : > { %v587_v57 = vadd.f32 %v586_v56, %v579_v55 }
 0x22d   : > { %v594_v59 = vadd.f32 %v593_v58, %v587_v57 }
 0x22e   : > { %v605_v61 = vpop.permute.xlu1 %604  ;;  %v612_v1 = vpop.permute.xlu0 %611 }
 0x22f   : > { %v601_v62 = vadd.f32 %v600_v60, %v594_v59  ;;  %v607_v63 = vsel %vm602_vm10, %v605_v61, 0.0  ;;  %v614_v4 = vsel %vm609_vm11, %v612_v1, 0.0 }
 0x231   : > { %v608_v3 = vadd.f32 %v607_v63, %v601_v62 }
 0x233   : > { %v619_v5 = vpop.permute.xlu1 %618  ;;  %v615_v6 = vadd.f32 %v614_v4, %v608_v3 }
 0x234   : > { %v621_v7 = vsel %vm616_vm12, %v619_v5, 0.0 }
 0x235   : > { %v622_v8 = vadd.f32 %v621_v7, %v615_v6 }
 0x238   : > { %v626_v9 = vpop.permute.xlu1 %625 }
 0x239   : > { %v628_v10 = vsel %vm623_vm13, %v626_v9, 0.0 }
 0x23a   : > { %v629_v11 = vadd.f32 %v628_v10, %v622_v8 }
 0x23c   : > { %v668_v12 = vadd.f32 %v667_v37, %v629_v11 }
 0x23e   : > { %v673_v13 = vsel %vm516_vm3, %v668_v12, -inf }
 0x23f   : > { %674 = vmax.xlane.f32.xlu0 %v673_v13 }
 0x2c8   : > { %v675_v14 = vpop.xlane.xlu0 %674 }
 0x2c9   : > { %v676_v15 = vsub.f32 %v668_v12, %v675_v14 }
 0x2cb   : > { %v677_v16 = vmul.f32 1.442695, %v676_v15 }
 0x2cd   : > { %1115 = vpow2.f32 %v677_v16 }
 0x2da   : > { %v1116_v17 = vpop.eup %1115 }
 0x2db   : > { %v679_v18 = vsel %vm516_vm3, %v1116_v17, 0.0 }
 0x2dc   : > { %680 = vadd.xlane.f32.xlu1 %v679_v18 }
 0x365   : > { %v681_v19 = vpop.xlane.xlu1 %680 }
 0x366   : > { %1117 = vrcp.f32 %v681_v19 }
 0x373   : > { %v1118_v20 = vpop.eup %1117 }
 0x374   : > { %v683_v21 = vmul.f32 %v1118_v20, %v1116_v17 }
 0x376   : > { %v684_v22 = vpack.c.bf16 %v683_v21, %v683_v21 }
 0x378   : > { %1009 = vmatmul.mubr.msk.bf16.vlgmr.msra.gmra.mxu1 %vm516_vm3, %v684_v22 }
 0x438   : > { %v725_v23 = vpop.f32.mrf.mxu1 }
 0x43a   : > { %v1010_v24 = vpop.f32.mrf.mxu1  ;;  %734 = sbr.rel (%p944_p0) target bundleno = 1089 (0x441), region = 48 }
 0x43c   : > { %v728_v25 = vpop.f32.mrf.mxu1 }
 0x43e   : > { %v1011_v26 = vpop.f32.mrf.mxu1 }
 0x43f   : > { %v1223_v27 = vmov 0.0  }
 0x440   : > { %735 = vst.msk [vmem:[%s312_s23] sm:$0xff] %vm364_vm1, %v1223_v27 }
 0x441 PF: > { %1012 = vmatprep.subr.bf16.mxu0 %v1213_v0  ;;  %v742_v28 = vsel %vm520_vm2, %v1353_v2, 0  ;;  %1014 = vmatprep.mubr.msk.bf16.mxu0 %vm1214_vm0, %v1213_v0  ;;  %v737_v29 = vpack.c.bf16 %v725_v23, %v725_v23  ;;  %s947_s24 = sshll.u32 %s1199_s25, 7  ;;  %s800_s26 = sshll.u32 %s312_s23, 4  ;;  %s1405_s26 = int_to_ptr.vmem [resolvable:$true] %s800_s26 }
 0x442   : > { %1013 = vmatpush3.bf16.msra.mxu0 %v742_v28  ;;  %s1403_s14 = scalar_lea.hbm %s1464_s6, %s947_s24  ;;  %s1478_s15 = sand.u32 1, %s1187_s22  }
 0x443   : > { %s787_s17 = scalar_lea.sflag [#allocation3], %s1478_s15  ;;  %s1119_s25 = scalar_lea.vmem %s1405_s26, 128 }
 0x444   : > { %p1120_p1 = scmp.ne.s32.totalorder %s1405_s26, %s1119_s25  ;;  %s1224_s18 = smov [#allocation2]  }
 0x445   : > { %1015 = vmatmul.mubr.msk.bf16.vlgmr.msra.gmra.mxu0 %vm516_vm3, %v737_v29  ;;  %s1123_s30 = sshll.u32 %s1224_s18, 4  ;;  %s1124_s30 = int_to_ptr.vmem [resolvable:$false] %s1123_s30 }
 0x446   : > { %p1121_p2 = pnand %p1120_p1, %p1309_p3  ;;  %s1125_s11 = scalar_lea.vmem %s1124_s30, 256 }
 0x447   : > { %v736_v30 = vld [vmem:[%s312_s23] sm:$0xff]  ;;  %p1126_p5 = scmp.lt.s32.totalorder %s1405_s26, %s1124_s30  ;;  %p1127_p6 = scmp.lt.s32.totalorder %s1125_s11, %s1119_s25 }
 0x448   : > { %p1122_p4 = pneg %p1121_p2 }
 0x449   : > { %p1128_p7 = por %p1127_p6, %p1126_p5 }
 0x44b   : > { %p1129_p8 = pnand %p1128_p7, %p1122_p4 }
 0x505   : > { %v778_v31 = vpop.f32.mrf.mxu0 }
 0x506   : > { %v784_v32 = vadd.f32 %v778_v31, %v736_v30 }
 0x507   : > { %v1016_v0 = vpop.f32.mrf.mxu0 }
 0x508   : > { %785 = vst.msk [vmem:[%s312_s23] sm:$0xff] %vm364_vm1, %v784_v32 }
 0x509   : > { %v781_v2 = vpop.f32.mrf.mxu0 }
 0x50a   : > { %1132 = shalt.err (!%p1129_p8)
}
 0x50b   : > { %s1133_s12 = scalar_lea.hbm %s1403_s14, 128  ;;  %s1137_s29 = scalar_lea.hbm %s1464_s6, 256 }
 0x50c   : > { %p1134_p10 = scmp.ne.s32.totalorder %s1403_s14, %s1133_s12  ;;  %p1138_p13 = scmp.lt.s32.totalorder %s1403_s14, %s1464_s6 }
 0x50d   : > { %p1139_p0 = scmp.lt.s32.totalorder %s1137_s29, %s1133_s12 }
 0x50e   : > { %p1135_p11 = pnand %p1134_p10, %p1309_p3 }
 0x50f   : > { %p1140_p1 = por %p1139_p0, %p1138_p13 }
 0x510   : > { %p1136_p12 = pneg %p1135_p11 }
 0x512   : > { %p1141_p2 = pnand %p1140_p1, %p1136_p12 }
 0x514   : > { %1144 = shalt.err (!%p1141_p2)
}
 0x515   : > { %1018 = dma.vmem_to_hbm [thread:$0]  (%p1309_p3), %s1405_s26, 128, %s1403_s14, %s787_s17   ;;  %v1017_v33 = vpop.f32.mrf.mxu0 }
 0x516 PF: > { %p1024_p4 = scmp.ge.s32.totalorder %s1211_s28, 2  ;;  %s812_s8 = sand.u32 1, %s1183_s21  }
 0x517   : > { %s813_s23 = scalar_lea.sflag [#allocation3], %s812_s8 }
 0x518   : > { %p1021_p5 = pnand %p1024_p4, %p1319_p9 }
 0x51a   : > { %p1022_p6 = pneg %p1021_p5 }
 0x51c   : > { %1178 = dma.done.wait (%p1022_p6), %s813_s23, 128  }
 0x51d   : > { %1180 = vsyncadd (%p1022_p6), %s813_s23, 4294967168  ;;  %s19_s28 = sadd.s32 1, %s1211_s28   ;;  %s1479_s9 = sld [smem:[#allocation5_spill]] }
 0x51e   : > { %p16_p7 = scmp.ge.s32.totalorder %s19_s28, 10   ;;  %s1480_s23 = sld [smem:[#allocation10_spill]] }
 0x51f   : > { %s1481_s24 = sld [smem:[#allocation6_spill]]  ;;  %s1485_s21 = smov %s1187_s22 }
 0x520   : > { %s1482_s25 = sld [smem:[#allocation7_spill]]  ;;  %18 = sbr.rel (!%p16_p7) target bundleno = 5 (0x5), region = 95 }
 0x521   : > { %s1483_s26 = sld [smem:[#allocation8_spill]] }
 0x522   : > { %s1484_s27 = sld [smem:[#allocation9_spill]] }
 0x523   : > { %s1486_s22 = smov %s1479_s9 }
 0x525   :  { %818 = vsyncpa [#allocation3], 1 }
 0x526   :  { %820 = vsyncpa [#allocation3 + $0x1], 1 }

</bundles_post_ra>
